<compile_context>
chip_gen: v6e
topology: v6e:2x2x1
jax: 0.10.0
libtpu: 0.0.40
codegen_flags: <defaults>
</compile_context>

<pallas_src>
import jax
import jax.numpy as jnp
from jax.experimental import pallas as pl
from jax.experimental.pallas import tpu as pltpu

BN_EPS = 1e-5
LANE = 128  # TPU vreg lane width; feature dims padded to a multiple of this.


# ---------------------------------------------------------------------------
# Fused kernel
# ---------------------------------------------------------------------------
def _dense_relu_bn(h_f32, w_ref, b_ref, gamma_ref, beta_ref):
    """Linear -> ReLU -> BatchNorm1d (train-mode batch stats), f32 epilogue."""
    # MXU matmul in the parameter dtype (bf16 on v6e/v7x), f32 accumulation.
    z = jnp.dot(h_f32.astype(w_ref.dtype), w_ref[...],
                preferred_element_type=jnp.float32)
    z = z + b_ref[...].astype(jnp.float32)

    a = jnp.maximum(z, 0.0)  # ReLU

    # One-pass batch statistics (biased variance == torch train mode).
    inv_n = 1.0 / a.shape[0]
    mean = jnp.sum(a, axis=0, keepdims=True) * inv_n          # XLU reduce
    ex2 = jnp.sum(a * a, axis=0, keepdims=True) * inv_n       # XLU reduce
    var = ex2 - mean * mean
    inv_std = jax.lax.rsqrt(var + BN_EPS)                     # EUP
    scale = inv_std * gamma_ref[...].astype(jnp.float32)
    shift = beta_ref[...].astype(jnp.float32)
    return (a - mean) * scale + shift


def make_fused_mlp_kernel(num_hidden):
    """Fused forward: Block0, residual Blocks 1..H-1, final Linear."""

    def kernel(*refs):
        x_ref = refs[0]
        hid = refs[1:1 + 4 * num_hidden]
        w_out_ref, b_out_ref, o_ref = refs[1 + 4 * num_hidden:]

        h = x_ref[...].astype(jnp.float32)

        # First block (no residual).
        h = _dense_relu_bn(h, hid[0], hid[1], hid[2], hid[3])

        # Middle blocks with residual:  h = h + Block_i(h)
        for i in range(1, num_hidden):
            w_ref, b_ref, g_ref, be_ref = hid[4 * i:4 * i + 4]
            h = h + _dense_relu_bn(h, w_ref, b_ref, g_ref, be_ref)

        # Final Linear (with bias), no output activation.
        z = jnp.dot(h.astype(w_out_ref.dtype), w_out_ref[...],
                    preferred_element_type=jnp.float32)
        z = z + b_out_ref[...].astype(jnp.float32)
        o_ref[...] = z.astype(o_ref.dtype)

    return kernel


# ---------------------------------------------------------------------------
# Host-side helpers: padding / layout
# ---------------------------------------------------------------------------
def _round_up(n, m):
    return ((n + m - 1) // m) * m


def _pad_axis(a, target, axis, value=0.0):
    if a.shape[axis] == target:
        return a
    widths = [(0, 0)] * a.ndim
    widths[axis] = (0, target - a.shape[axis])
    return jnp.pad(a, widths, constant_values=value)


def prepare_kernel_params(raw, dtype=jnp.float32):
    """Transpose to (F_in, F_out) and zero-pad feature dims to LANE multiples.

    `dtype` is the matmul-operand dtype; use jnp.bfloat16 on v6e/v7x for the
    native MXU path (accumulation + BN epilogue stay f32 inside the kernel).
    """
    hidden = []
    prev_out = None
    for idx, layer in enumerate(raw["hidden"]):
        n_out, n_in = layer["w"].shape
        if idx >= 1:
            # Residual x = x + block(x) requires matching dims (as in torch).
            assert n_in == n_out == prev_out, "residual blocks need equal dims"
        fi, fo = _round_up(n_in, LANE), _round_up(n_out, LANE)
        w_t = _pad_axis(_pad_axis(jnp.asarray(layer["w"].T, dtype), fi, 0), fo, 1)
        b = _pad_axis(layer["b"].reshape(1, -1).astype(dtype), fo, 1)
        gamma = _pad_axis(layer["gamma"].reshape(1, -1).astype(dtype), fo, 1, 1.0)
        beta = _pad_axis(layer["beta"].reshape(1, -1).astype(dtype), fo, 1)
        hidden.append({"w_t": w_t, "b": b, "gamma": gamma, "beta": beta})
        prev_out = n_out

    n_out, n_in = raw["out"]["w"].shape
    fi, fo = _round_up(n_in, LANE), _round_up(n_out, LANE)
    w_t = _pad_axis(_pad_axis(jnp.asarray(raw["out"]["w"].T, dtype), fi, 0), fo, 1)
    b = _pad_axis(raw["out"]["b"].reshape(1, -1).astype(dtype), fo, 1)

    return {
        "dtype": dtype,
        "in_features": raw["in_features"],
        "out_features": raw["out_features"],
        "f_in_pad": _round_up(raw["in_features"], LANE),
        "f_out_pad": fo,
        "hidden": hidden,
        "out": {"w_t": w_t, "b": b},
    }


# ---------------------------------------------------------------------------
# Pallas wrapper: one fused call, everything VMEM-resident, no grid.
# ---------------------------------------------------------------------------
def mlp_vanilla_forward(kp, x):
    n = x.shape[0]  # batch is NOT padded: BN stats must cover exactly N rows.
    x_p = _pad_axis(x.astype(kp["dtype"]), kp["f_in_pad"], 1)

    args = [x_p]
    for layer in kp["hidden"]:
        args.extend([layer["w_t"], layer["b"], layer["gamma"], layer["beta"]])
    args.extend([kp["out"]["w_t"], kp["out"]["b"]])

    vmem = pl.BlockSpec(memory_space=pltpu.MemorySpace.VMEM)
    out_p = pl.pallas_call(
        make_fused_mlp_kernel(len(kp["hidden"])),
        out_shape=jax.ShapeDtypeStruct((n, kp["f_out_pad"]), jnp.float32),
        in_specs=[vmem] * len(args),
        out_specs=vmem,
    )(*args)
    return out_p[:, :kp["out_features"]]


# ---------------------------------------------------------------------------
# Parameter init (kaiming-normal-style weights, like the module's w_init_;
# BN gamma=1 / beta=0; nn.Linear-style uniform biases). Deterministic.
# ---------------------------------------------------------------------------
def init_mlp_params(key, in_features, num_nodes, out_features, dtype=jnp.float32):
    dims = [in_features] + list(num_nodes)
    hidden = []
    for n_in, n_out in zip(dims[:-1], dims[1:]):
        key, kw, kb = jax.random.split(key, 3)
        w = jax.random.normal(kw, (n_out, n_in), dtype) * jnp.sqrt(2.0 / n_in)
        bound = 1.0 / jnp.sqrt(n_in)
        b = jax.random.uniform(kb, (n_out,), dtype, -bound, bound)
        hidden.append({"w": w, "b": b,
                       "gamma": jnp.ones((n_out,), dtype),
                       "beta": jnp.zeros((n_out,), dtype)})
    key, kw, kb = jax.random.split(key, 3)
    n_in = dims[-1]
    w = jax.random.normal(kw, (out_features, n_in), dtype) * jnp.sqrt(2.0 / n_in)
    bound = 1.0 / jnp.sqrt(n_in)
    b = jax.random.uniform(kb, (out_features,), dtype, -bound, bound)
    return {"in_features": in_features, "out_features": out_features,
            "hidden": hidden, "out": {"w": w, "b": b}}


# ---------------------------------------------------------------------------
# Pure-JAX reference (unpadded, torch-layout weights) with the residual
# structure of MLPVanilla1.forward.
# ---------------------------------------------------------------------------
def mlp_vanilla_ref(raw, x):
    def block(h, layer):
        z = h @ layer["w"].T + layer["b"]
        a = jnp.maximum(z, 0.0)
        mean = jnp.mean(a, axis=0, keepdims=True)
        var = jnp.mean((a - mean) ** 2, axis=0, keepdims=True)
        return (a - mean) * jax.lax.rsqrt(var + BN_EPS) * layer["gamma"] + layer["beta"]

    h = block(x, raw["hidden"][0])
    for layer in raw["hidden"][1:]:
        h = h + block(h, layer)
    return h @ raw["out"]["w"].T + raw["out"]["b"]


if __name__ == "__main__":
    key = jax.random.PRNGKey(0)
    k_params, k_x = jax.random.split(key)

    batch = 8
    in_features = 16
    num_nodes = [32, 32]   # residual middle block requires equal hidden dims
    out_features = 8

    raw = init_mlp_params(k_params, in_features, num_nodes, out_features)
    # Use jnp.bfloat16 here on v6e/v7x for the native MXU path; f32 keeps the
    # correctness check below exact.
    kparams = prepare_kernel_params(raw, dtype=jnp.float32)

    x = jax.random.normal(k_x, (batch, in_features), jnp.float32)

    out = mlp_vanilla_forward(kparams, x)
    out = jax.block_until_ready(out)

    ref = mlp_vanilla_ref(raw, x)
    assert out.shape == (batch, out_features)
    assert jnp.allclose(out, ref, atol=5e-4, rtol=5e-4), (
        float(jnp.max(jnp.abs(out - ref))))

    # TODO(synk): eval-mode BatchNorm (running stats) and dropout are not
    # implemented; module defaults (train-mode batch stats, dropout=None) are.
    print("KERNEL_OK")
</pallas_src>

<mosaic_0001>
module attributes {stable_mosaic.version = 11 : i64} {
  func.func @kernel(%arg0: memref<8x128xf32, #tpu.memory_space<vmem>>, %arg1: memref<128x128xf32, #tpu.memory_space<vmem>>, %arg2: memref<1x128xf32, #tpu.memory_space<vmem>>, %arg3: memref<1x128xf32, #tpu.memory_space<vmem>>, %arg4: memref<1x128xf32, #tpu.memory_space<vmem>>, %arg5: memref<128x128xf32, #tpu.memory_space<vmem>>, %arg6: memref<1x128xf32, #tpu.memory_space<vmem>>, %arg7: memref<1x128xf32, #tpu.memory_space<vmem>>, %arg8: memref<1x128xf32, #tpu.memory_space<vmem>>, %arg9: memref<128x128xf32, #tpu.memory_space<vmem>>, %arg10: memref<1x128xf32, #tpu.memory_space<vmem>>, %arg11: memref<8x128xf32, #tpu.memory_space<vmem>>) attributes {dimension_semantics = [], scalar_prefetch = 0 : i64, scratch_operands = 0 : i64, tpu.core_type = #tpu.core_type<tc>} {
    %c0 = arith.constant 0 : index
    %c0_0 = arith.constant 0 : index
    %0 = vector.load %arg0[%c0, %c0_0] : memref<8x128xf32, #tpu.memory_space<vmem>>, vector<8x128xf32>
    %c0_1 = arith.constant 0 : index
    %c0_2 = arith.constant 0 : index
    %1 = vector.load %arg1[%c0_1, %c0_2] : memref<128x128xf32, #tpu.memory_space<vmem>>, vector<128x128xf32>
    %cst = arith.constant dense<0.000000e+00> : vector<8x128xf32>
    %2 = tpu.matmul %0, %1, %cst {dimension_numbers = #tpu.dot_dimension_numbers<[1], [0], [0], [1], [0, 0, 1, 1], [], []>} : vector<8x128xf32>, vector<128x128xf32>, vector<8x128xf32> -> vector<8x128xf32>
    %c0_3 = arith.constant 0 : index
    %c0_4 = arith.constant 0 : index
    %3 = vector.load %arg2[%c0_3, %c0_4] : memref<1x128xf32, #tpu.memory_space<vmem>>, vector<1x128xf32>
    %4 = vector.broadcast %3 : vector<1x128xf32> to vector<8x128xf32>
    %5 = arith.addf %2, %4 : vector<8x128xf32>
    %cst_5 = arith.constant 0.000000e+00 : f32
    %6 = vector.broadcast %cst_5 : f32 to vector<8x128xf32>
    %7 = arith.maximumf %5, %6 : vector<8x128xf32>
    %cst_6 = arith.constant dense<0.000000e+00> : vector<128xf32>
    %8 = vector.multi_reduction <add>, %7, %cst_6 [0] : vector<8x128xf32> to vector<128xf32>
    %9 = vector.shape_cast %8 : vector<128xf32> to vector<1x128xf32>
    %cst_7 = arith.constant 1.250000e-01 : f32
    %10 = vector.broadcast %cst_7 : f32 to vector<1x128xf32>
    %11 = arith.mulf %9, %10 : vector<1x128xf32>
    %12 = arith.mulf %7, %7 : vector<8x128xf32>
    %cst_8 = arith.constant dense<0.000000e+00> : vector<128xf32>
    %13 = vector.multi_reduction <add>, %12, %cst_8 [0] : vector<8x128xf32> to vector<128xf32>
    %14 = vector.shape_cast %13 : vector<128xf32> to vector<1x128xf32>
    %cst_9 = arith.constant 1.250000e-01 : f32
    %15 = vector.broadcast %cst_9 : f32 to vector<1x128xf32>
    %16 = arith.mulf %14, %15 : vector<1x128xf32>
    %17 = arith.mulf %11, %11 : vector<1x128xf32>
    %18 = arith.subf %16, %17 : vector<1x128xf32>
    %cst_10 = arith.constant 9.99999974E-6 : f32
    %19 = vector.broadcast %cst_10 : f32 to vector<1x128xf32>
    %20 = arith.addf %18, %19 : vector<1x128xf32>
    %21 = math.rsqrt %20 : vector<1x128xf32>
    %c0_11 = arith.constant 0 : index
    %c0_12 = arith.constant 0 : index
    %22 = vector.load %arg3[%c0_11, %c0_12] : memref<1x128xf32, #tpu.memory_space<vmem>>, vector<1x128xf32>
    %23 = arith.mulf %21, %22 : vector<1x128xf32>
    %c0_13 = arith.constant 0 : index
    %c0_14 = arith.constant 0 : index
    %24 = vector.load %arg4[%c0_13, %c0_14] : memref<1x128xf32, #tpu.memory_space<vmem>>, vector<1x128xf32>
    %25 = vector.broadcast %11 : vector<1x128xf32> to vector<8x128xf32>
    %26 = arith.subf %7, %25 : vector<8x128xf32>
    %27 = vector.broadcast %23 : vector<1x128xf32> to vector<8x128xf32>
    %28 = arith.mulf %26, %27 : vector<8x128xf32>
    %29 = vector.broadcast %24 : vector<1x128xf32> to vector<8x128xf32>
    %30 = arith.addf %28, %29 : vector<8x128xf32>
    %c0_15 = arith.constant 0 : index
    %c0_16 = arith.constant 0 : index
    %31 = vector.load %arg5[%c0_15, %c0_16] : memref<128x128xf32, #tpu.memory_space<vmem>>, vector<128x128xf32>
    %cst_17 = arith.constant dense<0.000000e+00> : vector<8x128xf32>
    %32 = tpu.matmul %30, %31, %cst_17 {dimension_numbers = #tpu.dot_dimension_numbers<[1], [0], [0], [1], [0, 0, 1, 1], [], []>} : vector<8x128xf32>, vector<128x128xf32>, vector<8x128xf32> -> vector<8x128xf32>
    %c0_18 = arith.constant 0 : index
    %c0_19 = arith.constant 0 : index
    %33 = vector.load %arg6[%c0_18, %c0_19] : memref<1x128xf32, #tpu.memory_space<vmem>>, vector<1x128xf32>
    %34 = vector.broadcast %33 : vector<1x128xf32> to vector<8x128xf32>
    %35 = arith.addf %32, %34 : vector<8x128xf32>
    %cst_20 = arith.constant 0.000000e+00 : f32
    %36 = vector.broadcast %cst_20 : f32 to vector<8x128xf32>
    %37 = arith.maximumf %35, %36 : vector<8x128xf32>
    %cst_21 = arith.constant dense<0.000000e+00> : vector<128xf32>
    %38 = vector.multi_reduction <add>, %37, %cst_21 [0] : vector<8x128xf32> to vector<128xf32>
    %39 = vector.shape_cast %38 : vector<128xf32> to vector<1x128xf32>
    %cst_22 = arith.constant 1.250000e-01 : f32
    %40 = vector.broadcast %cst_22 : f32 to vector<1x128xf32>
    %41 = arith.mulf %39, %40 : vector<1x128xf32>
    %42 = arith.mulf %37, %37 : vector<8x128xf32>
    %cst_23 = arith.constant dense<0.000000e+00> : vector<128xf32>
    %43 = vector.multi_reduction <add>, %42, %cst_23 [0] : vector<8x128xf32> to vector<128xf32>
    %44 = vector.shape_cast %43 : vector<128xf32> to vector<1x128xf32>
    %cst_24 = arith.constant 1.250000e-01 : f32
    %45 = vector.broadcast %cst_24 : f32 to vector<1x128xf32>
    %46 = arith.mulf %44, %45 : vector<1x128xf32>
    %47 = arith.mulf %41, %41 : vector<1x128xf32>
    %48 = arith.subf %46, %47 : vector<1x128xf32>
    %cst_25 = arith.constant 9.99999974E-6 : f32
    %49 = vector.broadcast %cst_25 : f32 to vector<1x128xf32>
    %50 = arith.addf %48, %49 : vector<1x128xf32>
    %51 = math.rsqrt %50 : vector<1x128xf32>
    %c0_26 = arith.constant 0 : index
    %c0_27 = arith.constant 0 : index
    %52 = vector.load %arg7[%c0_26, %c0_27] : memref<1x128xf32, #tpu.memory_space<vmem>>, vector<1x128xf32>
    %53 = arith.mulf %51, %52 : vector<1x128xf32>
    %c0_28 = arith.constant 0 : index
    %c0_29 = arith.constant 0 : index
    %54 = vector.load %arg8[%c0_28, %c0_29] : memref<1x128xf32, #tpu.memory_space<vmem>>, vector<1x128xf32>
    %55 = vector.broadcast %41 : vector<1x128xf32> to vector<8x128xf32>
    %56 = arith.subf %37, %55 : vector<8x128xf32>
    %57 = vector.broadcast %53 : vector<1x128xf32> to vector<8x128xf32>
    %58 = arith.mulf %56, %57 : vector<8x128xf32>
    %59 = vector.broadcast %54 : vector<1x128xf32> to vector<8x128xf32>
    %60 = arith.addf %58, %59 : vector<8x128xf32>
    %61 = arith.addf %30, %60 : vector<8x128xf32>
    %c0_30 = arith.constant 0 : index
    %c0_31 = arith.constant 0 : index
    %62 = vector.load %arg9[%c0_30, %c0_31] : memref<128x128xf32, #tpu.memory_space<vmem>>, vector<128x128xf32>
    %cst_32 = arith.constant dense<0.000000e+00> : vector<8x128xf32>
    %63 = tpu.matmul %61, %62, %cst_32 {dimension_numbers = #tpu.dot_dimension_numbers<[1], [0], [0], [1], [0, 0, 1, 1], [], []>} : vector<8x128xf32>, vector<128x128xf32>, vector<8x128xf32> -> vector<8x128xf32>
    %c0_33 = arith.constant 0 : index
    %c0_34 = arith.constant 0 : index
    %64 = vector.load %arg10[%c0_33, %c0_34] : memref<1x128xf32, #tpu.memory_space<vmem>>, vector<1x128xf32>
    %65 = vector.broadcast %64 : vector<1x128xf32> to vector<8x128xf32>
    %66 = arith.addf %63, %65 : vector<8x128xf32>
    %c0_35 = arith.constant 0 : index
    %c0_36 = arith.constant 0 : index
    %67 = vector.load %arg11[%c0_35, %c0_36] : memref<8x128xf32, #tpu.memory_space<vmem>>, vector<8x128xf32>
    tpu.vector_store %arg11[%c0_35, %c0_36], %66 {strides = array<i32>} : memref<8x128xf32, #tpu.memory_space<vmem>>, vector<8x128xf32>,
    return
  }
}

</mosaic_0001>

<bundles_post_ra>
// kernel: tpu_custom_call.1
= control target key start
LH: loop header
LB: loop body
LE: loop exit
PB: predicated region body
PF: predicated region fallthrough
CT: control target
= control target key end

     0   :  { %16 = vsyncpa [#allocation3], 0  ;;  %s924_s0 = inlined_call_operand.hbm [shape: f32[8,128], index: 0, kind: input, shape index: {}]   ;;  %s925_s1 = inlined_call_operand.hbm [shape: f32[128,128], index: 1, kind: input, shape index: {}]   ;;  %s926_s2 = inlined_call_operand.vmem [shape: f32[1,128], index: 2, kind: input, shape index: {}]   ;;  %s927_s3 = inlined_call_operand.vmem [shape: f32[1,128], index: 3, kind: input, shape index: {}]   ;;  %s928_s4 = inlined_call_operand.vmem [shape: f32[1,128], index: 4, kind: input, shape index: {}]   ;;  %s929_s5 = inlined_call_operand.hbm [shape: f32[128,128], index: 5, kind: input, shape index: {}]   ;;  %s930_s6 = inlined_call_operand.vmem [shape: f32[1,128], index: 6, kind: input, shape index: {}]   ;;  %s931_s7 = inlined_call_operand.vmem [shape: f32[1,128], index: 7, kind: input, shape index: {}]   ;;  %s932_s8 = inlined_call_operand.vmem [shape: f32[1,128], index: 8, kind: input, shape index: {}]   ;;  %s933_s9 = inlined_call_operand.hbm [shape: f32[128,128], index: 9, kind: input, shape index: {}]   ;;  %s934_s10 = inlined_call_operand.vmem [shape: f32[1,128], index: 10, kind: input, shape index: {}]   ;;  %s935_s11 = inlined_call_operand.hbm [shape: f32[8,128], index: 11, kind: output, shape index: {}]  }
   0x1   :  { %17 = vsyncpa [#allocation6], 0 }
   0x2   :  { %18 = vsyncpa [#allocation9], 0 }
   0x3   :  { %19 = vsyncpa [#allocation4], 0  ;;  %s745_s17 = smov [#allocation5]  }
   0x4   :  { %s35_s18 = sshll.u32 %s745_s17, 4  ;;  %s36_s18 = int_to_ptr.vmem [resolvable:$true] %s35_s18 }
   0x5   :  { %s645_s19 = scalar_lea.vmem %s36_s18, 2048  ;;  %p650_p1 = scmp.lt.s32.totalorder %s36_s18, %s36_s18 }
   0x6   :  { %p646_p0 = scmp.ne.s32.totalorder %s36_s18, %s645_s19  ;;  %p651_p2 = scmp.lt.s32.totalorder %s645_s19, %s645_s19 }
   0x8   :  { %p652_p3 = por %p651_p2, %p650_p1 }
   0xa   :  { %p653_p4 = pnand %p652_p3, %p646_p0 }
   0xc   :  { %656 = shalt.err (!%p653_p4)
}
   0xd   :  { %s746_s20 = smov 128   ;;  %s747_s21 = smov 8  }
   0xe   :  { %41 = dma.hbm_to_vmem [thread:$0]  %s925_s1, 2048, %s36_s18, [#allocation6], %s746_s20, %s746_s20, %s747_s21  }
   0xf   :  { %s748_s24 = smov [#allocation2]   ;;  %s749_s26 = smov [#allocation7]  }
  0x10   :  { %s26_s25 = sshll.u32 %s748_s24, 4  ;;  %s53_s27 = sshll.u32 %s749_s26, 4  ;;  %s27_s25 = int_to_ptr.vmem [resolvable:$true] %s26_s25  ;;  %s54_s27 = int_to_ptr.vmem [resolvable:$true] %s53_s27 }
  0x11   :  { %s665_s28 = scalar_lea.vmem %s27_s25, 128  ;;  %p670_p6 = scmp.lt.s32.totalorder %s27_s25, %s27_s25 }
  0x12   :  { %p666_p5 = scmp.ne.s32.totalorder %s27_s25, %s665_s28  ;;  %p671_p7 = scmp.lt.s32.totalorder %s665_s28, %s665_s28 }
  0x14   :  { %p672_p8 = por %p671_p7, %p670_p6 }
  0x16   :  { %p673_p9 = pnand %p672_p8, %p666_p5 }
  0x18   :  { %676 = shalt.err (!%p673_p9)
}
  0x19   :  { %29 = dma.hbm_to_vmem [thread:$0]  %s924_s0, 128, %s27_s25, [#allocation3]  }
  0x1a   :  { %s685_s12 = scalar_lea.vmem %s54_s27, 2048  ;;  %p690_p11 = scmp.lt.s32.totalorder %s54_s27, %s54_s27 }
  0x1b   :  { %p686_p10 = scmp.ne.s32.totalorder %s54_s27, %s685_s12  ;;  %p691_p12 = scmp.lt.s32.totalorder %s685_s12, %s685_s12 }
  0x1d   :  { %p692_p13 = por %p691_p12, %p690_p11 }
  0x1f   :  { %p693_p0 = pnand %p692_p13, %p686_p10 }
  0x21   :  { %696 = shalt.err (!%p693_p0)
}
  0x22   :  { %59 = dma.hbm_to_vmem [thread:$0]  %s929_s5, 2048, %s54_s27, [#allocation6], %s746_s20, %s746_s20, %s747_s21  }
  0x23   :  { %s750_s14 = smov [#allocation8]  }
  0x24   :  { %s71_s15 = sshll.u32 %s750_s14, 4  ;;  %s72_s15 = int_to_ptr.vmem [resolvable:$true] %s71_s15 }
  0x25   :  { %s705_s16 = scalar_lea.vmem %s72_s15, 2048  ;;  %p710_p2 = scmp.lt.s32.totalorder %s72_s15, %s72_s15 }
  0x26   :  { %p706_p1 = scmp.ne.s32.totalorder %s72_s15, %s705_s16  ;;  %p711_p3 = scmp.lt.s32.totalorder %s705_s16, %s705_s16 }
  0x28   :  { %p712_p4 = por %p711_p3, %p710_p2 }
  0x2a   :  { %p713_p5 = pnand %p712_p4, %p706_p1 }
  0x2c   :  { %716 = shalt.err (!%p713_p5)
}
  0x2d   :  { %77 = dma.hbm_to_vmem [thread:$0]  %s933_s9, 2048, %s72_s15, [#allocation9], %s746_s20, %s746_s20, %s747_s21  }
  0x2e   :  { %737 = dma.done.wait [#allocation3], 128  }
  0x2f   :  { %738 = vsyncadd [#allocation3], 4294967168 }
  0x30   :  { %739 = dma.done.wait [#allocation6], 4096  }
  0x31   :  { %740 = vsyncadd [#allocation6], 4294963200 }
  0x32   :  { %741 = dma.done.wait [#allocation9], 2048  }
  0x33   :  { %742 = vsyncadd [#allocation9], 4294965248  ;;  %v751_v0 = vmov 0.0   ;;  %vm752_vm0 = vmmov 0   ;;  %v108_v1 = vld [vmem:[#allocation5 + $0x78] sm:$0xff]  ;;  %v107_v2 = vld [vmem:[#allocation5 + $0x70] sm:$0xff]  ;;  %v210_v57 = vlaneseq }
  0x34   :  { %519 = vmatprep.subr.mxu0 %v751_v0  ;;  %551 = vmatprep.mubr.msk.f32.mxu0 %vm752_vm0, %v751_v0  ;;  %v106_v3 = vld [vmem:[#allocation5 + $0x68] sm:$0xff]  ;;  %v105_v4 = vld [vmem:[#allocation5 + $0x60] sm:$0xff]  ;;  %v104_v5 = vld [vmem:[#allocation5 + $0x58] sm:$0xff] }
  0x35   :  { %554 = vmatprep.subr.mxu1 %v751_v0  ;;  %586 = vmatprep.mubr.msk.f32.mxu1 %vm752_vm0, %v751_v0  ;;  %v103_v6 = vld [vmem:[#allocation5 + $0x50] sm:$0xff]  ;;  %v102_v7 = vld [vmem:[#allocation5 + $0x48] sm:$0xff]  ;;  %v101_v8 = vld [vmem:[#allocation5 + $0x40] sm:$0xff]  ;;  %v877_v58 = vshrl.u32 %v210_v57, 7 }
  0x36   :  { %520 = vmatpush3.msra.mxu0 %v108_v1  ;;  %v100_v9 = vld [vmem:[#allocation5 + $0x38] sm:$0xff]  ;;  %v99_v10 = vld [vmem:[#allocation5 + $0x30] sm:$0xff]  ;;  %v98_v11 = vld [vmem:[#allocation5 + $0x28] sm:$0xff] }
  0x37   :  { %521 = vmatprep.subr.mxu0 %v751_v0  ;;  %v97_v12 = vld [vmem:[#allocation5 + $0x20] sm:$0xff]  ;;  %v96_v13 = vld [vmem:[#allocation5 + $0x18] sm:$0xff]  ;;  %v95_v14 = vld [vmem:[#allocation5 + $0x10] sm:$0xff]  ;;  %v212_v60 = vsub.s32 0, %v877_v58 }
  0x38   :  { %522 = vmatpush3.msra.mxu0 %v107_v2  ;;  %v94_v15 = vld [vmem:[#allocation5 + $0x8] sm:$0xff]  ;;  %v93_v16 = vld [vmem:[#allocation5] sm:$0xff]  ;;  %v92_v17 = vld [vmem:[#allocation2] sm:$0xff] }
  0x39   :  { %523 = vmatprep.subr.mxu0 %v751_v0  ;;  %v237_v18 = vld [vmem:[#allocation7 + $0x78] sm:$0xff]  ;;  %v236_v19 = vld [vmem:[#allocation7 + $0x70] sm:$0xff]  ;;  %v235_v20 = vld [vmem:[#allocation7 + $0x68] sm:$0xff] }
  0x3a   :  { %524 = vmatpush3.msra.mxu0 %v106_v3  ;;  %555 = vmatpush3.msra.mxu1 %v237_v18  ;;  %v234_v21 = vld [vmem:[#allocation7 + $0x60] sm:$0xff]  ;;  %v233_v22 = vld [vmem:[#allocation7 + $0x58] sm:$0xff]  ;;  %v232_v23 = vld [vmem:[#allocation7 + $0x50] sm:$0xff] }
  0x3b   :  { %525 = vmatprep.subr.mxu0 %v751_v0  ;;  %556 = vmatprep.subr.mxu1 %v751_v0  ;;  %v231_v24 = vld [vmem:[#allocation7 + $0x48] sm:$0xff]  ;;  %v230_v25 = vld [vmem:[#allocation7 + $0x40] sm:$0xff]  ;;  %v229_v26 = vld [vmem:[#allocation7 + $0x38] sm:$0xff] }
  0x3c   :  { %526 = vmatpush3.msra.mxu0 %v105_v4  ;;  %557 = vmatpush3.msra.mxu1 %v236_v19  ;;  %v228_v27 = vld [vmem:[#allocation7 + $0x30] sm:$0xff]  ;;  %v227_v28 = vld [vmem:[#allocation7 + $0x28] sm:$0xff]  ;;  %v226_v29 = vld [vmem:[#allocation7 + $0x20] sm:$0xff] }
  0x3d   :  { %527 = vmatprep.subr.mxu0 %v751_v0  ;;  %558 = vmatprep.subr.mxu1 %v751_v0  ;;  %v225_v30 = vld [vmem:[#allocation7 + $0x18] sm:$0xff]  ;;  %v224_v31 = vld [vmem:[#allocation7 + $0x10] sm:$0xff]  ;;  %v223_v32 = vld [vmem:[#allocation7 + $0x8] sm:$0xff] }
  0x3e   :  { %528 = vmatpush3.msra.mxu0 %v104_v5  ;;  %559 = vmatpush3.msra.mxu1 %v235_v20  ;;  %v222_v33 = vld [vmem:[#allocation7] sm:$0xff]  ;;  %v463_v34 = vld [vmem:[%s926_s2] ss:$0 sm:$0xff]  ;;  %v354_v18 = vld [vmem:[#allocation8 + $0x10] sm:$0xff] }
  0x3f   :  { %529 = vmatprep.subr.mxu0 %v751_v0  ;;  %560 = vmatprep.subr.mxu1 %v751_v0  ;;  %v206_v59 = vld [vmem:[%s927_s3] sm:$0x1]  ;;  %v353_v19 = vld [vmem:[#allocation8 + $0x8] sm:$0xff]  ;;  %v352_v20 = vld [vmem:[#allocation8] sm:$0xff] }
  0x40   :  { %530 = vmatpush3.msra.mxu0 %v103_v6  ;;  %561 = vmatpush3.msra.mxu1 %v234_v21  ;;  %v464_v2 = vld [vmem:[%s928_s4] ss:$0 sm:$0xff]  ;;  %v366_v6 = vld [vmem:[#allocation8 + $0x70] sm:$0xff] }
  0x41   :  { %531 = vmatprep.subr.mxu0 %v751_v0  ;;  %562 = vmatprep.subr.mxu1 %v751_v0  ;;  %v367_v5 = vld [vmem:[#allocation8 + $0x78] sm:$0xff] }
  0x42   :  { %532 = vmatpush3.msra.mxu0 %v102_v7  ;;  %563 = vmatpush3.msra.mxu1 %v233_v22  ;;  %v365_v7 = vld [vmem:[#allocation8 + $0x68] sm:$0xff]  ;;  %v465_v21 = vld [vmem:[%s930_s6] ss:$0 sm:$0xff] }
  0x43   :  { %533 = vmatprep.subr.mxu0 %v751_v0  ;;  %564 = vmatprep.subr.mxu1 %v751_v0 }
  0x44   :  { %534 = vmatpush3.msra.mxu0 %v101_v8  ;;  %565 = vmatpush3.msra.mxu1 %v232_v23  ;;  %v364_v8 = vld [vmem:[#allocation8 + $0x60] sm:$0xff] }
  0x45   :  { %535 = vmatprep.subr.mxu0 %v751_v0  ;;  %566 = vmatprep.subr.mxu1 %v751_v0 }
  0x46   :  { %536 = vmatpush3.msra.mxu0 %v100_v9  ;;  %567 = vmatpush3.msra.mxu1 %v231_v24  ;;  %v363_v9 = vld [vmem:[#allocation8 + $0x58] sm:$0xff] }
  0x47   :  { %537 = vmatprep.subr.mxu0 %v751_v0  ;;  %568 = vmatprep.subr.mxu1 %v751_v0 }
  0x48   :  { %538 = vmatpush3.msra.mxu0 %v99_v10  ;;  %569 = vmatpush3.msra.mxu1 %v230_v25  ;;  %v362_v10 = vld [vmem:[#allocation8 + $0x50] sm:$0xff] }
  0x49   :  { %539 = vmatprep.subr.mxu0 %v751_v0  ;;  %570 = vmatprep.subr.mxu1 %v751_v0 }
  0x4a   :  { %540 = vmatpush3.msra.mxu0 %v98_v11  ;;  %571 = vmatpush3.msra.mxu1 %v229_v26  ;;  %v361_v11 = vld [vmem:[#allocation8 + $0x48] sm:$0xff] }
  0x4b   :  { %541 = vmatprep.subr.mxu0 %v751_v0  ;;  %572 = vmatprep.subr.mxu1 %v751_v0 }
  0x4c   :  { %542 = vmatpush3.msra.mxu0 %v97_v12  ;;  %573 = vmatpush3.msra.mxu1 %v228_v27  ;;  %v360_v12 = vld [vmem:[#allocation8 + $0x40] sm:$0xff] }
  0x4d   :  { %543 = vmatprep.subr.mxu0 %v751_v0  ;;  %574 = vmatprep.subr.mxu1 %v751_v0 }
  0x4e   :  { %544 = vmatpush3.msra.mxu0 %v96_v13  ;;  %575 = vmatpush3.msra.mxu1 %v227_v28  ;;  %v359_v13 = vld [vmem:[#allocation8 + $0x38] sm:$0xff] }
  0x4f   :  { %545 = vmatprep.subr.mxu0 %v751_v0  ;;  %576 = vmatprep.subr.mxu1 %v751_v0 }
  0x50   :  { %546 = vmatpush3.msra.mxu0 %v95_v14  ;;  %577 = vmatpush3.msra.mxu1 %v226_v29  ;;  %v358_v14 = vld [vmem:[#allocation8 + $0x30] sm:$0xff] }
  0x51   :  { %547 = vmatprep.subr.mxu0 %v751_v0  ;;  %578 = vmatprep.subr.mxu1 %v751_v0 }
  0x52   :  { %548 = vmatpush3.msra.mxu0 %v94_v15  ;;  %579 = vmatpush3.msra.mxu1 %v225_v30  ;;  %v357_v15 = vld [vmem:[#allocation8 + $0x28] sm:$0xff] }
  0x53   :  { %549 = vmatprep.subr.mxu0 %v751_v0  ;;  %580 = vmatprep.subr.mxu1 %v751_v0 }
  0x54   :  { %550 = vmatpush3.msra.mxu0 %v93_v16  ;;  %581 = vmatpush3.msra.mxu1 %v224_v31  ;;  %v356_v16 = vld [vmem:[#allocation8 + $0x20] sm:$0xff] }
  0x55   :  { %552 = vmatmul.mubr.f32.vlgmr.msra.gmra.mxu0 %v92_v17  ;;  %589 = vmatprep.subr.mxu0 %v751_v0  ;;  %v355_v17 = vld [vmem:[#allocation8 + $0x18] sm:$0xff] }
  0x56   :  { %621 = vmatprep.mubr.msk.f32.mxu0 %vm752_vm0, %v751_v0  ;;  %582 = vmatprep.subr.mxu1 %v751_v0 }
  0x57   :  { %583 = vmatpush3.msra.mxu1 %v223_v32  ;;  %590 = vmatpush3.msra.mxu0 %v367_v5 }
  0x58   :  { %584 = vmatprep.subr.mxu1 %v751_v0  ;;  %591 = vmatprep.subr.mxu0 %v751_v0 }
  0x59   :  { %585 = vmatpush3.msra.mxu1 %v222_v33  ;;  %592 = vmatpush3.msra.mxu0 %v366_v6 }
  0x5a   :  { %593 = vmatprep.subr.mxu0 %v751_v0 }
  0x5b   :  { %594 = vmatpush3.msra.mxu0 %v365_v7 }
  0x5c   :  { %595 = vmatprep.subr.mxu0 %v751_v0 }
  0x5d   :  { %596 = vmatpush3.msra.mxu0 %v364_v8 }
  0x5e   :  { %597 = vmatprep.subr.mxu0 %v751_v0 }
  0x5f   :  { %598 = vmatpush3.msra.mxu0 %v363_v9 }
  0x60   :  { %599 = vmatprep.subr.mxu0 %v751_v0 }
  0x61   :  { %600 = vmatpush3.msra.mxu0 %v362_v10 }
  0x62   :  { %601 = vmatprep.subr.mxu0 %v751_v0 }
  0x63   :  { %602 = vmatpush3.msra.mxu0 %v361_v11 }
  0x64   :  { %603 = vmatprep.subr.mxu0 %v751_v0 }
  0x65   :  { %604 = vmatpush3.msra.mxu0 %v360_v12 }
  0x66   :  { %605 = vmatprep.subr.mxu0 %v751_v0 }
  0x67   :  { %606 = vmatpush3.msra.mxu0 %v359_v13 }
  0x68   :  { %607 = vmatprep.subr.mxu0 %v751_v0 }
  0x69   :  { %608 = vmatpush3.msra.mxu0 %v358_v14 }
  0x6a   :  { %609 = vmatprep.subr.mxu0 %v751_v0 }
  0x6b   :  { %610 = vmatpush3.msra.mxu0 %v357_v15 }
  0x6c   :  { %611 = vmatprep.subr.mxu0 %v751_v0 }
  0x6d   :  { %612 = vmatpush3.msra.mxu0 %v356_v16 }
  0x6e   :  { %613 = vmatprep.subr.mxu0 %v751_v0 }
  0x6f   :  { %614 = vmatpush3.msra.mxu0 %v355_v17 }
  0x70   :  { %615 = vmatprep.subr.mxu0 %v751_v0 }
  0x71   :  { %616 = vmatpush3.msra.mxu0 %v354_v18 }
  0x72   :  { %617 = vmatprep.subr.mxu0 %v751_v0 }
  0x73   :  { %618 = vmatpush3.msra.mxu0 %v353_v19 }
  0x74   :  { %619 = vmatprep.subr.mxu0 %v751_v0 }
  0x75   :  { %620 = vmatpush3.msra.mxu0 %v352_v20 }
 0x115   :  { %v182_v35 = vpop.f32.mrf.mxu0 }
 0x116   :  { %v183_v36 = vadd.f32 %v463_v34, %v182_v35 }
 0x117   :  { %v553_v37 = vpop.f32.mrf.mxu0 }
 0x118   :  { %v186_v38 = vmax.f32 %v183_v36, 0.0 }
 0x11a   :  { %v187_v39 = vrot.slane %v186_v38, 4  ;;  %v194_v40 = vmul.f32 %v186_v38, %v186_v38 }
 0x11c   :  { %v188_v41 = vadd.f32 %v187_v39, %v186_v38  ;;  %v195_v42 = vrot.slane %v194_v40, 4 }
 0x11e   :  { %v189_v43 = vrot.slane %v188_v41, 2  ;;  %v196_v44 = vadd.f32 %v195_v42, %v194_v40 }
 0x120   :  { %v190_v45 = vadd.f32 %v189_v43, %v188_v41  ;;  %v197_v46 = vrot.slane %v196_v44, 2  ;;  %v335_v43 = vld [vmem:[%s931_s7] sm:$0x1]  ;;  %s753_s7 = smov [#allocation10]  }
 0x121   :  { %s452_s26 = sshll.u32 %s753_s7, 4  ;;  %s453_s26 = int_to_ptr.vmem [resolvable:$true] %s452_s26 }
 0x122   :  { %v198_v47 = vadd.f32 %v197_v46, %v196_v44  ;;  %v191_v48 = vrot.slane %v190_v45, 1  ;;  %s717_s27 = scalar_lea.vmem %s453_s26, 128  ;;  %p722_p7 = scmp.lt.s32.totalorder %s453_s26, %s453_s26 }
 0x123   :  { %p718_p6 = scmp.ne.s32.totalorder %s453_s26, %s717_s27  ;;  %p723_p8 = scmp.lt.s32.totalorder %s717_s27, %s717_s27 }
 0x124   :  { %v199_v49 = vrot.slane %v198_v47, 1  ;;  %v192_v50 = vadd.f32 %v191_v48, %v190_v45  ;;  %v466_v48 = vld [vmem:[%s932_s8] ss:$0 sm:$0xff] }
 0x125   :  { %p724_p9 = por %p723_p8, %p722_p7 }
 0x126   :  { %v200_v51 = vadd.f32 %v199_v49, %v198_v47  ;;  %v193_v52 = vmul.f32 0.125, %v192_v50 }
 0x127   :  { %p725_p10 = pnand %p724_p9, %p718_p6 }
 0x128   :  { %v201_v53 = vmul.f32 0.125, %v200_v51  ;;  %v202_v54 = vmul.f32 %v193_v52, %v193_v52  ;;  %v209_v63 = vsub.f32 %v186_v38, %v193_v52  ;;  %v467_v52 = vld [vmem:[%s934_s10] ss:$0 sm:$0xff] }
 0x12a   :  { %v203_v55 = vsub.f32 %v201_v53, %v202_v54 }
 0x12c   :  { %v204_v56 = vadd.f32 1e-05, %v203_v55 }
 0x12e   :  { %633 = vrsqrt.f32 %v204_v56 }
 0x13b   :  { %v634_v61 = vpop.eup %633 }
 0x13c   :  { %v207_v62 = vmul.f32 %v634_v61, %v206_v59 }
 0x13e   :  { %v213_v1 = vrot.slane %v207_v62, %v212_v60 }
 0x140   :  { %v214_v3 = vmul.f32 %v213_v1, %v209_v63 }
 0x142   :  { %v888_v4 = vadd.f32 %v464_v2, %v214_v3 }
 0x144   :  { %587 = vmatmul.mubr.f32.vlgmr.msra.gmra.mxu1 %v888_v4 }
 0x204   :  { %v311_v22 = vpop.f32.mrf.mxu1 }
 0x205   :  { %v312_v23 = vadd.f32 %v465_v21, %v311_v22 }
 0x206   :  { %v588_v24 = vpop.f32.mrf.mxu1 }
 0x207   :  { %v315_v25 = vmax.f32 %v312_v23, 0.0 }
 0x209   :  { %v316_v26 = vrot.slane %v315_v25, 4  ;;  %v323_v27 = vmul.f32 %v315_v25, %v315_v25 }
 0x20b   :  { %v317_v28 = vadd.f32 %v316_v26, %v315_v25  ;;  %v324_v29 = vrot.slane %v323_v27, 4 }
 0x20d   :  { %v318_v30 = vrot.slane %v317_v28, 2  ;;  %v325_v31 = vadd.f32 %v324_v29, %v323_v27 }
 0x20f   :  { %v319_v32 = vadd.f32 %v318_v30, %v317_v28  ;;  %v326_v33 = vrot.slane %v325_v31, 2 }
 0x211   :  { %v320_v34 = vrot.slane %v319_v32, 1  ;;  %v327_v35 = vadd.f32 %v326_v33, %v325_v31 }
 0x213   :  { %v321_v0 = vadd.f32 %v320_v34, %v319_v32  ;;  %v328_v36 = vrot.slane %v327_v35, 1 }
 0x215   :  { %v322_v37 = vmul.f32 0.125, %v321_v0  ;;  %v329_v38 = vadd.f32 %v328_v36, %v327_v35 }
 0x217   :  { %v330_v39 = vmul.f32 0.125, %v329_v38  ;;  %v331_v40 = vmul.f32 %v322_v37, %v322_v37  ;;  %v338_v46 = vsub.f32 %v315_v25, %v322_v37 }
 0x219   :  { %v332_v41 = vsub.f32 %v330_v39, %v331_v40 }
 0x21b   :  { %v333_v42 = vadd.f32 1e-05, %v332_v41 }
 0x21d   :  { %635 = vrsqrt.f32 %v333_v42 }
 0x22a   :  { %v636_v44 = vpop.eup %635 }
 0x22b   :  { %v336_v45 = vmul.f32 %v636_v44, %v335_v43 }
 0x22d   :  { %v342_v47 = vrot.slane %v336_v45, %v212_v60 }
 0x22f   :  { %v343_v49 = vmul.f32 %v342_v47, %v338_v46 }
 0x231   :  { %v350_v50 = vadd.f32 %v466_v48, %v343_v49 }
 0x233   :  { %v351_v51 = vadd.f32 %v350_v50, %v888_v4 }
 0x235   :  { %622 = vmatmul.mubr.f32.vlgmr.msra.gmra.mxu0 %v351_v51 }
 0x2f5   :  { %v441_v53 = vpop.f32.mrf.mxu0 }
 0x2f6   :  { %v442_v54 = vadd.f32 %v467_v52, %v441_v53 }
 0x2f7   :  { %v623_v55 = vpop.f32.mrf.mxu0 }
 0x2f8   :  { %445 = vst [vmem:[#allocation10] sm:$0xff] %v442_v54 }
 0x2f9   :  { %728 = shalt.err (!%p725_p10)
}
 0x2fa   :  { %455 = dma.vmem_to_hbm [thread:$0]  %s453_s26, 128, %s935_s11, [#allocation4]  }
 0x2fb   :  { %743 = dma.done.wait [#allocation4], 128  }
 0x2fc   :  { %744 = vsyncadd [#allocation4], 4294967168 }
 0x2fd   :  { %459 = vsyncpa [#allocation3], 1 }
 0x2fe   :  { %460 = vsyncpa [#allocation6], 1 }
 0x2ff   :  { %461 = vsyncpa [#allocation9], 1 }
 0x300   :  { %462 = vsyncpa [#allocation4], 1 }

</bundles_post_ra>
